<compile_context>
chip_gen: v6e
topology: v6e:2x2x1
jax: 0.10.0
libtpu: 0.0.40
codegen_flags: <defaults>
</compile_context>

<pallas_src>
import jax
import jax.numpy as jnp
from jax.experimental import pallas as pl
from jax.experimental.pallas import tpu as pltpu


def _discriminator_kernel(x_ref, w1_ref, b1_ref, w2_ref, b2_ref,
                          w3_ref, b3_ref, out_ref):
    # x_ref : (TB, Dp)  bf16      w1_ref: (Dp, 512) bf16    b1_ref: (1, 512) f32
    # w2_ref: (512,256) bf16      b2_ref: (1, 256)  f32
    # w3_ref: (1, 256)  f32 row   b3_ref: (1, 1)    f32 in SMEM
    # out_ref: (TB, 1)  f32
    x = x_ref[...]

    # Layer 1: bf16 MXU matmul, f32 accumulate; bias + LeakyReLU in f32.
    h1 = jnp.dot(x, w1_ref[...], preferred_element_type=jnp.float32) + b1_ref[...]
    h1 = jnp.where(h1 > 0, h1, 0.2 * h1)

    # Layer 2: cast activation to bf16 for the MXU, accumulate in f32.
    h2 = jnp.dot(h1.astype(jnp.bfloat16), w2_ref[...],
                 preferred_element_type=jnp.float32) + b2_ref[...]
    h2 = jnp.where(h2 > 0, h2, 0.2 * h2)

    # Layer 3 (N=1): VPU multiply + lane reduce instead of an MXU matmul.
    out = jnp.sum(h2 * w3_ref[...], axis=-1, keepdims=True) + b3_ref[0, 0]
    out_ref[...] = out.astype(out_ref.dtype)


def discriminator_forward(img, params):
    """img: (B, C, H, W) float32 -> validity: (B, 1) float32."""
    B = img.shape[0]
    x = img.reshape(B, -1).astype(jnp.float32)   # same row-major flatten as torch .view
    D = x.shape[1]
    w1, b1, w2, b2, w3, b3 = params

    # Pad the contraction dim to a lane-aligned multiple of 128 (zeros don't
    # change the dot product).
    Dp = ((D + 127) // 128) * 128
    if Dp != D:
        x = jnp.pad(x, ((0, 0), (0, Dp - D)))
        w1 = jnp.pad(w1, ((0, Dp - D), (0, 0)))

    # Batch tiling: TB clamps to B for small batches; 256 otherwise.
    TB = B if B <= 256 else 256
    num_tiles = -(-B // TB)          # cdiv
    Bp = num_tiles * TB
    if Bp != B:
        x = jnp.pad(x, ((0, Bp - B), (0, 0)))

    # bf16 storage / MXU inputs; biases and the final row stay f32.
    x_bf = x.astype(jnp.bfloat16)
    w1_bf = w1.astype(jnp.bfloat16)
    w2_bf = w2.astype(jnp.bfloat16)
    w3_row = w3.reshape(1, -1).astype(jnp.float32)   # (1, 256)
    b3_s = b3.reshape(1, 1).astype(jnp.float32)

    out = pl.pallas_call(
        _discriminator_kernel,
        out_shape=jax.ShapeDtypeStruct((Bp, 1), jnp.float32),
        grid=(num_tiles,),
        in_specs=[
            pl.BlockSpec((TB, Dp), lambda i: (i, 0)),        # x     (batch-tiled)
            pl.BlockSpec((Dp, 512), lambda i: (0, 0)),       # w1    (resident)
            pl.BlockSpec((1, 512), lambda i: (0, 0)),        # b1
            pl.BlockSpec((512, 256), lambda i: (0, 0)),      # w2
            pl.BlockSpec((1, 256), lambda i: (0, 0)),        # b2
            pl.BlockSpec((1, 256), lambda i: (0, 0)),        # w3 row
            pl.BlockSpec(memory_space=pltpu.MemorySpace.SMEM),  # b3 scalar
        ],
        out_specs=pl.BlockSpec((TB, 1), lambda i: (i, 0)),
        compiler_params=pltpu.CompilerParams(
            dimension_semantics=("parallel",),
            vmem_limit_bytes=48 * 1024 * 1024,
        ),
    )(x_bf, w1_bf, b1, w2_bf, b2, w3_row, b3_s)
    return out[:B]


def init_params(key, in_features):
    """Deterministic PyTorch-style uniform(-1/sqrt(fan_in), 1/sqrt(fan_in)) init."""
    dims = [(in_features, 512), (512, 256), (256, 1)]
    params = []
    for (fan_in, fan_out) in dims:
        key, kw, kb = jax.random.split(key, 3)
        bound = 1.0 / jnp.sqrt(jnp.float32(fan_in))
        w = jax.random.uniform(kw, (fan_in, fan_out), jnp.float32, -bound, bound)
        b = jax.random.uniform(kb, (1, fan_out), jnp.float32, -bound, bound)
        params += [w, b]
    return tuple(params)


def _reference(img, params):
    w1, b1, w2, b2, w3, b3 = params
    x = img.reshape(img.shape[0], -1)
    h1 = x @ w1 + b1
    h1 = jnp.where(h1 > 0, h1, 0.2 * h1)
    h2 = h1 @ w2 + b2
    h2 = jnp.where(h2 > 0, h2, 0.2 * h2)
    return h2 @ w3 + b3


if __name__ == "__main__":
    key = jax.random.PRNGKey(0)
    k_img, k_par = jax.random.split(key)

    # small shapes consistent with the module: channels=1, img_size=16
    B, C, H, W = 8, 1, 16, 16
    img = jax.random.normal(k_img, (B, C, H, W), jnp.float32)

    params = init_params(k_par, C * H * W)

    out = discriminator_forward(img, params)
    out = jax.block_until_ready(out)

    ref = _reference(img, params)
    assert out.shape == (B, 1)
    # bf16 MXU inputs with f32 accumulation: compare with a scaled tolerance.
    err = jnp.max(jnp.abs(out - ref))
    scale = jnp.maximum(jnp.max(jnp.abs(ref)), 1.0)
    assert float(err / scale) < 3e-2, (float(err), float(scale))

    print("KERNEL_OK")
</pallas_src>

<mosaic_0001>
module attributes {stable_mosaic.version = 11 : i64} {
  func.func @_discriminator_kernel(%arg0: i32, %arg1: memref<8x256xbf16, #tpu.memory_space<vmem>>, %arg2: memref<256x512xbf16, #tpu.memory_space<vmem>>, %arg3: memref<1x512xf32, #tpu.memory_space<vmem>>, %arg4: memref<512x256xbf16, #tpu.memory_space<vmem>>, %arg5: memref<1x256xf32, #tpu.memory_space<vmem>>, %arg6: memref<1x256xf32, #tpu.memory_space<vmem>>, %arg7: memref<1x1xf32, #tpu.memory_space<smem>>, %arg8: memref<8x1xf32, #tpu.memory_space<vmem>>) attributes {dimension_semantics = [#tpu.dimension_semantics<parallel>], iteration_bounds = array<i64: 1>, scalar_prefetch = 0 : i64, scratch_operands = 0 : i64, tpu.core_type = #tpu.core_type<tc>, window_params = [{transform_indices = @transform_0, window_bounds = array<i64: 8, 256>}, {pipeline_mode = #tpu.pipeline_mode<synchronous>, transform_indices = @transform_1, window_bounds = array<i64: 256, 512>}, {pipeline_mode = #tpu.pipeline_mode<synchronous>, transform_indices = @transform_2, window_bounds = array<i64: 1, 512>}, {pipeline_mode = #tpu.pipeline_mode<synchronous>, transform_indices = @transform_3, window_bounds = array<i64: 512, 256>}, {pipeline_mode = #tpu.pipeline_mode<synchronous>, transform_indices = @transform_4, window_bounds = array<i64: 1, 256>}, {pipeline_mode = #tpu.pipeline_mode<synchronous>, transform_indices = @transform_5, window_bounds = array<i64: 1, 256>}, {transform_indices = @transform_6, window_bounds = array<i64: 1, 1>}, {transform_indices = @transform_7, window_bounds = array<i64: 8, 1>}]} {
    %c0 = arith.constant 0 : index
    %c0_0 = arith.constant 0 : index
    %0 = vector.load %arg1[%c0, %c0_0] : memref<8x256xbf16, #tpu.memory_space<vmem>>, vector<8x256xbf16>
    %c0_1 = arith.constant 0 : index
    %c0_2 = arith.constant 0 : index
    %1 = vector.load %arg2[%c0_1, %c0_2] : memref<256x512xbf16, #tpu.memory_space<vmem>>, vector<256x512xbf16>
    %cst = arith.constant dense<0.000000e+00> : vector<8x512xf32>
    %2 = tpu.matmul %0, %1, %cst {dimension_numbers = #tpu.dot_dimension_numbers<[1], [0], [0], [1], [0, 0, 1, 1], [], []>} : vector<8x256xbf16>, vector<256x512xbf16>, vector<8x512xf32> -> vector<8x512xf32>
    %c0_3 = arith.constant 0 : index
    %c0_4 = arith.constant 0 : index
    %3 = vector.load %arg3[%c0_3, %c0_4] : memref<1x512xf32, #tpu.memory_space<vmem>>, vector<1x512xf32>
    %4 = vector.broadcast %3 : vector<1x512xf32> to vector<8x512xf32>
    %5 = arith.addf %2, %4 : vector<8x512xf32>
    %cst_5 = arith.constant 0.000000e+00 : f32
    %6 = vector.broadcast %cst_5 : f32 to vector<8x512xf32>
    %7 = arith.cmpf ogt, %5, %6 : vector<8x512xf32>
    %cst_6 = arith.constant 2.000000e-01 : f32
    %8 = vector.broadcast %cst_6 : f32 to vector<8x512xf32>
    %9 = arith.mulf %8, %5 : vector<8x512xf32>
    %10 = arith.select %7, %5, %9 : vector<8x512xi1>, vector<8x512xf32>
    %11 = arith.truncf %10 : vector<8x512xf32> to vector<8x512xbf16>
    %c0_7 = arith.constant 0 : index
    %c0_8 = arith.constant 0 : index
    %12 = vector.load %arg4[%c0_7, %c0_8] : memref<512x256xbf16, #tpu.memory_space<vmem>>, vector<512x256xbf16>
    %cst_9 = arith.constant dense<0.000000e+00> : vector<8x256xf32>
    %13 = tpu.matmul %11, %12, %cst_9 {dimension_numbers = #tpu.dot_dimension_numbers<[1], [0], [0], [1], [0, 0, 1, 1], [], []>} : vector<8x512xbf16>, vector<512x256xbf16>, vector<8x256xf32> -> vector<8x256xf32>
    %c0_10 = arith.constant 0 : index
    %c0_11 = arith.constant 0 : index
    %14 = vector.load %arg5[%c0_10, %c0_11] : memref<1x256xf32, #tpu.memory_space<vmem>>, vector<1x256xf32>
    %15 = vector.broadcast %14 : vector<1x256xf32> to vector<8x256xf32>
    %16 = arith.addf %13, %15 : vector<8x256xf32>
    %cst_12 = arith.constant 0.000000e+00 : f32
    %17 = vector.broadcast %cst_12 : f32 to vector<8x256xf32>
    %18 = arith.cmpf ogt, %16, %17 : vector<8x256xf32>
    %cst_13 = arith.constant 2.000000e-01 : f32
    %19 = vector.broadcast %cst_13 : f32 to vector<8x256xf32>
    %20 = arith.mulf %19, %16 : vector<8x256xf32>
    %21 = arith.select %18, %16, %20 : vector<8x256xi1>, vector<8x256xf32>
    %c0_14 = arith.constant 0 : index
    %c0_15 = arith.constant 0 : index
    %22 = vector.load %arg6[%c0_14, %c0_15] : memref<1x256xf32, #tpu.memory_space<vmem>>, vector<1x256xf32>
    %23 = vector.broadcast %22 : vector<1x256xf32> to vector<8x256xf32>
    %24 = arith.mulf %21, %23 : vector<8x256xf32>
    %cst_16 = arith.constant dense<0.000000e+00> : vector<8xf32>
    %25 = vector.multi_reduction <add>, %24, %cst_16 [1] : vector<8x256xf32> to vector<8xf32>
    %26 = vector.shape_cast %25 : vector<8xf32> to vector<8x1xf32>
    %c0_17 = arith.constant 0 : index
    %c0_18 = arith.constant 0 : index
    %27 = memref.load %arg7[%c0_17, %c0_18] : memref<1x1xf32, #tpu.memory_space<smem>>
    %28 = vector.broadcast %27 : f32 to vector<8x1xf32>
    %29 = arith.addf %26, %28 : vector<8x1xf32>
    %c0_19 = arith.constant 0 : index
    %c0_20 = arith.constant 0 : index
    %30 = vector.load %arg8[%c0_19, %c0_20] : memref<8x1xf32, #tpu.memory_space<vmem>>, vector<8x1xf32>
    tpu.vector_store %arg8[%c0_19, %c0_20], %29 {strides = array<i32>} : memref<8x1xf32, #tpu.memory_space<vmem>>, vector<8x1xf32>,
    return
  }
  func.func @transform_0(%arg0: i32) -> (i32, i32) {
    %c0_i32 = arith.constant 0 : i32
    %c0_i32_0 = arith.constant 0 : i32
    return %arg0, %c0_i32 : i32, i32
  }
  func.func @transform_1(%arg0: i32) -> (i32, i32) {
    %c0_i32 = arith.constant 0 : i32
    %c0_i32_0 = arith.constant 0 : i32
    %c0_i32_1 = arith.constant 0 : i32
    return %c0_i32, %c0_i32_0 : i32, i32
  }
  func.func @transform_2(%arg0: i32) -> (i32, i32) {
    %c0_i32 = arith.constant 0 : i32
    %c0_i32_0 = arith.constant 0 : i32
    %c0_i32_1 = arith.constant 0 : i32
    return %c0_i32, %c0_i32_0 : i32, i32
  }
  func.func @transform_3(%arg0: i32) -> (i32, i32) {
    %c0_i32 = arith.constant 0 : i32
    %c0_i32_0 = arith.constant 0 : i32
    %c0_i32_1 = arith.constant 0 : i32
    return %c0_i32, %c0_i32_0 : i32, i32
  }
  func.func @transform_4(%arg0: i32) -> (i32, i32) {
    %c0_i32 = arith.constant 0 : i32
    %c0_i32_0 = arith.constant 0 : i32
    %c0_i32_1 = arith.constant 0 : i32
    return %c0_i32, %c0_i32_0 : i32, i32
  }
  func.func @transform_5(%arg0: i32) -> (i32, i32) {
    %c0_i32 = arith.constant 0 : i32
    %c0_i32_0 = arith.constant 0 : i32
    %c0_i32_1 = arith.constant 0 : i32
    return %c0_i32, %c0_i32_0 : i32, i32
  }
  func.func @transform_6(%arg0: i32) -> (i32, i32) {
    %c0_i32 = arith.constant 0 : i32
    %c0_i32_0 = arith.constant 0 : i32
    %c0_i32_1 = arith.constant 0 : i32
    return %c0_i32, %c0_i32_0 : i32, i32
  }
  func.func @transform_7(%arg0: i32) -> (i32, i32) {
    %c0_i32 = arith.constant 0 : i32
    %c0_i32_0 = arith.constant 0 : i32
    return %arg0, %c0_i32 : i32, i32
  }
}

</mosaic_0001>

<bundles_post_ra>
// kernel: tpu_custom_call.1
= control target key start
LH: loop header
LB: loop body
LE: loop exit
PB: predicated region body
PF: predicated region fallthrough
CT: control target
= control target key end

     0   :  { %13 = vsyncpa [#allocation4], 0  ;;  %s1566_s0 = inlined_call_operand.hbm [shape: bf16[8,256], index: 0, kind: input, shape index: {}]   ;;  %s1567_s1 = inlined_call_operand.hbm [shape: bf16[256,512], index: 1, kind: input, shape index: {}]   ;;  %s1568_s2 = inlined_call_operand.vmem [shape: f32[1,512], index: 2, kind: input, shape index: {}]   ;;  %s1569_s3 = inlined_call_operand.hbm [shape: bf16[512,256], index: 3, kind: input, shape index: {}]   ;;  %s1570_s4 = inlined_call_operand.vmem [shape: f32[1,256], index: 4, kind: input, shape index: {}]   ;;  %s1571_s5 = inlined_call_operand.vmem [shape: f32[1,256], index: 5, kind: input, shape index: {}]   ;;  %s1572_s6 = inlined_call_operand.<no memory space> [shape: f32[1,1], index: 6, kind: input, shape index: {}]   ;;  %s1573_s7 = inlined_call_operand.vmem [shape: f32[8,1], index: 7, kind: output, shape index: {}]  }
   0x1   :  { %14 = vsyncpa [#allocation6], 0  ;;  %s1485_s24 = smov [#allocation5]  }
   0x2   :  { %s30_s25 = sshll.u32 %s1485_s24, 4  ;;  %s31_s25 = int_to_ptr.vmem [resolvable:$true] %s30_s25 }
   0x3   :  { %s1429_s26 = scalar_lea.vmem %s31_s25, 8192  ;;  %p1434_p1 = scmp.lt.s32.totalorder %s31_s25, %s31_s25 }
   0x4   :  { %p1430_p0 = scmp.ne.s32.totalorder %s31_s25, %s1429_s26  ;;  %p1435_p2 = scmp.lt.s32.totalorder %s1429_s26, %s1429_s26 }
   0x6   :  { %p1436_p3 = por %p1435_p2, %p1434_p1 }
   0x8   :  { %p1437_p4 = pnand %p1436_p3, %p1430_p0 }
   0xa   :  { %1440 = shalt.err (!%p1437_p4)
}
   0xb   :  { %s1486_s27 = smov 256   ;;  %s1487_s28 = smov 16  }
   0xc   :  { %36 = dma.hbm_to_vmem [thread:$0]  %s1567_s1, 8192, %s31_s25, [#allocation6], %s1486_s27, %s1486_s27, %s1487_s28  }
   0xd   :  { %s1488_s8 = smov [#allocation3]   ;;  %s1489_s10 = smov [#allocation7]  }
   0xe   :  { %s21_s9 = sshll.u32 %s1488_s8, 4  ;;  %s44_s11 = sshll.u32 %s1489_s10, 4  ;;  %s22_s9 = int_to_ptr.vmem [resolvable:$true] %s21_s9  ;;  %s45_s11 = int_to_ptr.vmem [resolvable:$true] %s44_s11 }
   0xf   :  { %s1449_s12 = scalar_lea.vmem %s22_s9, 128  ;;  %p1454_p6 = scmp.lt.s32.totalorder %s22_s9, %s22_s9 }
  0x10   :  { %p1450_p5 = scmp.ne.s32.totalorder %s22_s9, %s1449_s12  ;;  %p1455_p7 = scmp.lt.s32.totalorder %s1449_s12, %s1449_s12 }
  0x12   :  { %p1456_p8 = por %p1455_p7, %p1454_p6 }
  0x14   :  { %p1457_p9 = pnand %p1456_p8, %p1450_p5 }
  0x16   :  { %1460 = shalt.err (!%p1457_p9)
}
  0x17   :  { %24 = dma.hbm_to_vmem [thread:$0]  %s1566_s0, 128, %s22_s9, [#allocation4]  }
  0x18   :  { %s1469_s15 = scalar_lea.vmem %s45_s11, 8192  ;;  %p1474_p11 = scmp.lt.s32.totalorder %s45_s11, %s45_s11 }
  0x19   :  { %p1470_p10 = scmp.ne.s32.totalorder %s45_s11, %s1469_s15  ;;  %p1475_p12 = scmp.lt.s32.totalorder %s1469_s15, %s1469_s15 }
  0x1b   :  { %p1476_p13 = por %p1475_p12, %p1474_p11 }
  0x1d   :  { %p1477_p0 = pnand %p1476_p13, %p1470_p10 }
  0x1f   :  { %1480 = shalt.err (!%p1477_p0)
}
  0x20   :  { %s1490_s1 = smov 128   ;;  %s1491_s16 = smov 8  }
  0x21   :  { %50 = dma.hbm_to_vmem [thread:$0]  %s1569_s3, 8192, %s45_s11, [#allocation6], %s1490_s1, %s1490_s1, %s1491_s16  }
  0x22   :  { %1481 = dma.done.wait [#allocation4], 128  }
  0x23   :  { %1482 = vsyncadd [#allocation4], 4294967168 }
  0x24   :  { %1483 = dma.done.wait [#allocation6], 16384  }
  0x25   :  { %1484 = vsyncadd [#allocation6], 4294950912  ;;  %v1227_v0 = vld [vmem:[#allocation5 + $0xe4] ss:$16 sps:$4 sm:$0xff]   ;;  %v1229_v1 = vld [vmem:[#allocation5 + $0xec] ss:$16 sps:$4 sm:$0xff]  }
  0x26   :  { %480 = vmatprep.subr.bf16.mxu0 %v1227_v0  ;;  %v1231_v2 = vld [vmem:[#allocation5 + $0xe0] ss:$16 sps:$4 sm:$0xff]   ;;  %v1232_v3 = vld [vmem:[#allocation5 + $0xe8] ss:$16 sps:$4 sm:$0xff]   ;;  %521 = vmatprep.subr.bf16.mxu1 %v1229_v1  ;;  %v1233_v4 = vld [vmem:[#allocation5 + $0xc4] ss:$16 sps:$4 sm:$0xff]  }
  0x27   :  { %481 = vmatpush1.bf16.msra.mxu0 %v1231_v2  ;;  %522 = vmatpush1.bf16.msra.mxu1 %v1232_v3  ;;  %v1235_v5 = vld [vmem:[#allocation5 + $0xcc] ss:$16 sps:$4 sm:$0xff]   ;;  %v1237_v6 = vld [vmem:[#allocation5 + $0xc0] ss:$16 sps:$4 sm:$0xff]   ;;  %v1238_v7 = vld [vmem:[#allocation5 + $0xc8] ss:$16 sps:$4 sm:$0xff]  }
  0x28   :  { %482 = vmatprep.subr.bf16.mxu0 %v1233_v4  ;;  %523 = vmatprep.subr.bf16.mxu1 %v1235_v5  ;;  %v1239_v8 = vld [vmem:[#allocation5 + $0xa4] ss:$16 sps:$4 sm:$0xff]   ;;  %v1241_v9 = vld [vmem:[#allocation5 + $0xac] ss:$16 sps:$4 sm:$0xff]   ;;  %v1243_v10 = vld [vmem:[#allocation5 + $0xa0] ss:$16 sps:$4 sm:$0xff]  }
  0x29   :  { %v1244_v11 = vld [vmem:[#allocation5 + $0xa8] ss:$16 sps:$4 sm:$0xff]   ;;  %v1245_v12 = vld [vmem:[#allocation5 + $0x84] ss:$16 sps:$4 sm:$0xff]   ;;  %v1247_v13 = vld [vmem:[#allocation5 + $0x8c] ss:$16 sps:$4 sm:$0xff]  }
  0x2a   :  { %v1249_v14 = vld [vmem:[#allocation5 + $0x80] ss:$16 sps:$4 sm:$0xff]   ;;  %v1250_v15 = vld [vmem:[#allocation5 + $0x88] ss:$16 sps:$4 sm:$0xff]   ;;  %v1251_v16 = vld [vmem:[#allocation5 + $0x64] ss:$16 sps:$4 sm:$0xff]  }
  0x2b   :  { %483 = vmatpush1.bf16.msra.mxu0 %v1237_v6  ;;  %524 = vmatpush1.bf16.msra.mxu1 %v1238_v7  ;;  %v1253_v17 = vld [vmem:[#allocation5 + $0x6c] ss:$16 sps:$4 sm:$0xff]   ;;  %v1255_v18 = vld [vmem:[#allocation5 + $0x60] ss:$16 sps:$4 sm:$0xff]   ;;  %v1256_v19 = vld [vmem:[#allocation5 + $0x68] ss:$16 sps:$4 sm:$0xff]  }
  0x2c   :  { %484 = vmatprep.subr.bf16.mxu0 %v1239_v8  ;;  %525 = vmatprep.subr.bf16.mxu1 %v1241_v9  ;;  %v1257_v20 = vld [vmem:[#allocation5 + $0x44] ss:$16 sps:$4 sm:$0xff]   ;;  %v1259_v21 = vld [vmem:[#allocation5 + $0x4c] ss:$16 sps:$4 sm:$0xff]   ;;  %v1261_v22 = vld [vmem:[#allocation5 + $0x40] ss:$16 sps:$4 sm:$0xff]  }
  0x2d   :  { %v1262_v23 = vld [vmem:[#allocation5 + $0x48] ss:$16 sps:$4 sm:$0xff]   ;;  %v1263_v24 = vld [vmem:[#allocation5 + $0x24] ss:$16 sps:$4 sm:$0xff]   ;;  %v1265_v25 = vld [vmem:[#allocation5 + $0x2c] ss:$16 sps:$4 sm:$0xff]  }
  0x2e   :  { %v1267_v26 = vld [vmem:[#allocation5 + $0x20] ss:$16 sps:$4 sm:$0xff]   ;;  %v1268_v27 = vld [vmem:[#allocation5 + $0x28] ss:$16 sps:$4 sm:$0xff]   ;;  %v1269_v28 = vld [vmem:[#allocation5 + $0x4] ss:$16 sps:$4 sm:$0xff]  }
  0x2f   :  { %485 = vmatpush1.bf16.msra.mxu0 %v1243_v10  ;;  %526 = vmatpush1.bf16.msra.mxu1 %v1244_v11  ;;  %v1271_v29 = vld [vmem:[#allocation5 + $0xc] ss:$16 sps:$4 sm:$0xff]   ;;  %v1273_v30 = vld [vmem:[#allocation5] ss:$16 sps:$4 sm:$0xff]   ;;  %v1274_v31 = vld [vmem:[#allocation5 + $0x8] ss:$16 sps:$4 sm:$0xff]  }
  0x30   :  { %486 = vmatprep.subr.bf16.mxu0 %v1245_v12  ;;  %527 = vmatprep.subr.bf16.mxu1 %v1247_v13  ;;  %v1275_v32 = vld [vmem:[#allocation5 + $0x1e4] ss:$16 sps:$4 sm:$0xff]   ;;  %v1277_v33 = vld [vmem:[#allocation5 + $0x1ec] ss:$16 sps:$4 sm:$0xff]   ;;  %v1279_v34 = vld [vmem:[#allocation5 + $0x1e0] ss:$16 sps:$4 sm:$0xff]  }
  0x31   :  { %v1280_v35 = vld [vmem:[#allocation5 + $0x1e8] ss:$16 sps:$4 sm:$0xff]   ;;  %v1281_v36 = vld [vmem:[#allocation5 + $0x1c4] ss:$16 sps:$4 sm:$0xff]   ;;  %v1283_v37 = vld [vmem:[#allocation5 + $0x1cc] ss:$16 sps:$4 sm:$0xff]  }
  0x32   :  { %v1285_v38 = vld [vmem:[#allocation5 + $0x1c0] ss:$16 sps:$4 sm:$0xff]   ;;  %v1286_v39 = vld [vmem:[#allocation5 + $0x1c8] ss:$16 sps:$4 sm:$0xff]   ;;  %v1287_v40 = vld [vmem:[#allocation5 + $0x1a4] ss:$16 sps:$4 sm:$0xff]  }
  0x33   :  { %487 = vmatpush1.bf16.msra.mxu0 %v1249_v14  ;;  %528 = vmatpush1.bf16.msra.mxu1 %v1250_v15  ;;  %v1289_v41 = vld [vmem:[#allocation5 + $0x1ac] ss:$16 sps:$4 sm:$0xff]   ;;  %v1291_v42 = vld [vmem:[#allocation5 + $0x1a0] ss:$16 sps:$4 sm:$0xff]   ;;  %v1292_v43 = vld [vmem:[#allocation5 + $0x1a8] ss:$16 sps:$4 sm:$0xff]  }
  0x34   :  { %488 = vmatprep.subr.bf16.mxu0 %v1251_v16  ;;  %529 = vmatprep.subr.bf16.mxu1 %v1253_v17  ;;  %v1293_v44 = vld [vmem:[#allocation5 + $0x184] ss:$16 sps:$4 sm:$0xff]   ;;  %v1295_v45 = vld [vmem:[#allocation5 + $0x18c] ss:$16 sps:$4 sm:$0xff]   ;;  %v1297_v47 = vld [vmem:[#allocation5 + $0x180] ss:$16 sps:$4 sm:$0xff]  }
  0x35   :  { %v66_v46 = vld [vmem:[#allocation3] sm:$0xff]  ;;  %v1299_v50 = vld [vmem:[#allocation5 + $0x164] ss:$16 sps:$4 sm:$0xff]   ;;  %v1303_v52 = vld [vmem:[#allocation5 + $0x160] ss:$16 sps:$4 sm:$0xff]   ;;  %vm1082_vm6 = vcmask 7168  }
  0x36   :  { %v1091_v48 = vcombine.high %v66_v46, %v66_v46  ;;  %v1298_v49 = vld [vmem:[#allocation5 + $0x188] ss:$16 sps:$4 sm:$0xff]   ;;  %v1301_v51 = vld [vmem:[#allocation5 + $0x16c] ss:$16 sps:$4 sm:$0xff]   ;;  %v1305_v54 = vld [vmem:[#allocation5 + $0x144] ss:$16 sps:$4 sm:$0xff]   ;;  %v1090_v4 = vcombine.low %v66_v46, %v66_v46 }
  0x37   :  { %489 = vmatpush1.bf16.msra.mxu0 %v1255_v18  ;;  %530 = vmatpush1.bf16.msra.mxu1 %v1256_v19  ;;  %v1304_v53 = vld [vmem:[#allocation5 + $0x168] ss:$16 sps:$4 sm:$0xff]   ;;  %v1307_v55 = vld [vmem:[#allocation5 + $0x14c] ss:$16 sps:$4 sm:$0xff]   ;;  %v1309_v56 = vld [vmem:[#allocation5 + $0x140] ss:$16 sps:$4 sm:$0xff]  }
  0x38   :  { %490 = vmatprep.subr.bf16.mxu0 %v1257_v20  ;;  %531 = vmatprep.subr.bf16.mxu1 %v1259_v21  ;;  %v1310_v57 = vld [vmem:[#allocation5 + $0x148] ss:$16 sps:$4 sm:$0xff]   ;;  %v1311_v58 = vld [vmem:[#allocation5 + $0x124] ss:$16 sps:$4 sm:$0xff]   ;;  %v1313_v59 = vld [vmem:[#allocation5 + $0x12c] ss:$16 sps:$4 sm:$0xff]  }
  0x39   :  { %512 = vmatprep.mubr.bf16.mxu0 %v1091_v48  ;;  %553 = vmatprep.mubr.bf16.mxu1 %v1091_v48  ;;  %v1315_v60 = vld [vmem:[#allocation5 + $0x120] ss:$16 sps:$4 sm:$0xff]   ;;  %v1316_v61 = vld [vmem:[#allocation5 + $0x128] ss:$16 sps:$4 sm:$0xff]   ;;  %v1317_v62 = vld [vmem:[#allocation5 + $0x104] ss:$16 sps:$4 sm:$0xff]  }
  0x3a   :  { %v1319_v63 = vld [vmem:[#allocation5 + $0x10c] ss:$16 sps:$4 sm:$0xff]   ;;  %v1321_v0 = vld [vmem:[#allocation5 + $0x100] ss:$16 sps:$4 sm:$0xff]   ;;  %v1322_v1 = vld [vmem:[#allocation5 + $0x108] ss:$16 sps:$4 sm:$0xff]  }
  0x3b   :  { %491 = vmatpush1.bf16.msra.mxu0 %v1261_v22  ;;  %532 = vmatpush1.bf16.msra.mxu1 %v1262_v23  ;;  %v1327_v2 = vld [vmem:[#allocation7 + $0x74] ss:$8 sps:$4 sm:$0xff]   ;;  %v1325_v5 = vld [vmem:[#allocation7 + $0x70] ss:$8 sps:$4 sm:$0xff]   ;;  %v1333_v7 = vld [vmem:[#allocation7 + $0x64] ss:$8 sps:$4 sm:$0xff]  }
  0x3c   :  { %492 = vmatprep.subr.bf16.mxu0 %v1263_v24  ;;  %533 = vmatprep.subr.bf16.mxu1 %v1265_v25  ;;  %v1330_v3 = vld [vmem:[#allocation7 + $0x174] ss:$8 sps:$4 sm:$0xff]   ;;  %v1328_v6 = vld [vmem:[#allocation7 + $0x170] ss:$8 sps:$4 sm:$0xff]   ;;  %v1336_v8 = vld [vmem:[#allocation7 + $0x164] ss:$8 sps:$4 sm:$0xff]  }
  0x3d   :  { %v1331_v9 = vld [vmem:[#allocation7 + $0x60] ss:$8 sps:$4 sm:$0xff]   ;;  %v1339_v11 = vld [vmem:[#allocation7 + $0x54] ss:$8 sps:$4 sm:$0xff]   ;;  %v1337_v13 = vld [vmem:[#allocation7 + $0x50] ss:$8 sps:$4 sm:$0xff]  }
  0x3e   :  { %v1334_v10 = vld [vmem:[#allocation7 + $0x160] ss:$8 sps:$4 sm:$0xff]   ;;  %v1342_v12 = vld [vmem:[#allocation7 + $0x154] ss:$8 sps:$4 sm:$0xff]   ;;  %v1340_v14 = vld [vmem:[#allocation7 + $0x150] ss:$8 sps:$4 sm:$0xff]  }
  0x3f   :  { %493 = vmatpush1.bf16.msra.mxu0 %v1267_v26  ;;  %534 = vmatpush1.bf16.msra.mxu1 %v1268_v27  ;;  %v1345_v15 = vld [vmem:[#allocation7 + $0x44] ss:$8 sps:$4 sm:$0xff]   ;;  %v1343_v17 = vld [vmem:[#allocation7 + $0x40] ss:$8 sps:$4 sm:$0xff]   ;;  %v1351_v19 = vld [vmem:[#allocation7 + $0x34] ss:$8 sps:$4 sm:$0xff]  }
  0x40   :  { %494 = vmatprep.subr.bf16.mxu0 %v1269_v28  ;;  %535 = vmatprep.subr.bf16.mxu1 %v1271_v29  ;;  %v1348_v16 = vld [vmem:[#allocation7 + $0x144] ss:$8 sps:$4 sm:$0xff]   ;;  %v1346_v18 = vld [vmem:[#allocation7 + $0x140] ss:$8 sps:$4 sm:$0xff]   ;;  %v1354_v20 = vld [vmem:[#allocation7 + $0x134] ss:$8 sps:$4 sm:$0xff]  }
  0x41   :  { %v1349_v21 = vld [vmem:[#allocation7 + $0x30] ss:$8 sps:$4 sm:$0xff]   ;;  %v1357_v23 = vld [vmem:[#allocation7 + $0x24] ss:$8 sps:$4 sm:$0xff]   ;;  %v1355_v25 = vld [vmem:[#allocation7 + $0x20] ss:$8 sps:$4 sm:$0xff]  }
  0x42   :  { %v1352_v22 = vld [vmem:[#allocation7 + $0x130] ss:$8 sps:$4 sm:$0xff]   ;;  %v1360_v24 = vld [vmem:[#allocation7 + $0x124] ss:$8 sps:$4 sm:$0xff]   ;;  %v1358_v26 = vld [vmem:[#allocation7 + $0x120] ss:$8 sps:$4 sm:$0xff]  }
  0x43   :  { %495 = vmatpush1.bf16.msra.mxu0 %v1273_v30  ;;  %536 = vmatpush1.bf16.msra.mxu1 %v1274_v31  ;;  %v1363_v27 = vld [vmem:[#allocation7 + $0x14] ss:$8 sps:$4 sm:$0xff]   ;;  %v1361_v29 = vld [vmem:[#allocation7 + $0x10] ss:$8 sps:$4 sm:$0xff]   ;;  %v1369_v31 = vld [vmem:[#allocation7 + $0x4] ss:$8 sps:$4 sm:$0xff]  }
  0x44   :  { %496 = vmatprep.subr.bf16.mxu0 %v1275_v32  ;;  %537 = vmatprep.subr.bf16.mxu1 %v1277_v33  ;;  %v1366_v28 = vld [vmem:[#allocation7 + $0x114] ss:$8 sps:$4 sm:$0xff]   ;;  %v1364_v30 = vld [vmem:[#allocation7 + $0x110] ss:$8 sps:$4 sm:$0xff]   ;;  %v1372_v32 = vld [vmem:[#allocation7 + $0x104] ss:$8 sps:$4 sm:$0xff]  }
  0x45   :  { %v1367_v33 = vld [vmem:[#allocation7] ss:$8 sps:$4 sm:$0xff]   ;;  %v1388_v46 = vld [vmem:[#allocation7 + $0x1d0] ss:$8 sps:$4 sm:$0xff]   ;;  %v1396_v48 = vld [vmem:[#allocation7 + $0x1c4] ss:$8 sps:$4 sm:$0xff]  }
  0x47   :  { %497 = vmatpush2.bf16.msra.mxu0 %v1279_v34  ;;  %538 = vmatpush2.bf16.msra.mxu1 %v1280_v35  ;;  %v1370_v34 = vld [vmem:[#allocation7 + $0x100] ss:$8 sps:$4 sm:$0xff]   ;;  %v1375_v35 = vld [vmem:[#allocation7 + $0xf4] ss:$8 sps:$4 sm:$0xff]  }
  0x48   :  { %498 = vmatprep.subr.bf16.mxu0 %v1281_v36  ;;  %539 = vmatprep.subr.bf16.mxu1 %v1283_v37  ;;  %v1378_v36 = vld [vmem:[#allocation7 + $0x1f4] ss:$8 sps:$4 sm:$0xff]   ;;  %v1373_v37 = vld [vmem:[#allocation7 + $0xf0] ss:$8 sps:$4 sm:$0xff]  }
  0x4b   :  { %499 = vmatpush2.bf16.msra.mxu0 %v1285_v38  ;;  %540 = vmatpush2.bf16.msra.mxu1 %v1286_v39  ;;  %v1376_v38 = vld [vmem:[#allocation7 + $0x1f0] ss:$8 sps:$4 sm:$0xff]   ;;  %v1381_v39 = vld [vmem:[#allocation7 + $0xe4] ss:$8 sps:$4 sm:$0xff]  }
  0x4c   :  { %500 = vmatprep.subr.bf16.mxu0 %v1287_v40  ;;  %541 = vmatprep.subr.bf16.mxu1 %v1289_v41  ;;  %v1384_v40 = vld [vmem:[#allocation7 + $0x1e4] ss:$8 sps:$4 sm:$0xff]   ;;  %v1379_v41 = vld [vmem:[#allocation7 + $0xe0] ss:$8 sps:$4 sm:$0xff]  }
  0x4f   :  { %501 = vmatpush2.bf16.msra.mxu0 %v1291_v42  ;;  %542 = vmatpush2.bf16.msra.mxu1 %v1292_v43  ;;  %v1382_v42 = vld [vmem:[#allocation7 + $0x1e0] ss:$8 sps:$4 sm:$0xff]   ;;  %v1387_v43 = vld [vmem:[#allocation7 + $0xd4] ss:$8 sps:$4 sm:$0xff]  }
  0x50   :  { %502 = vmatprep.subr.bf16.mxu0 %v1293_v44  ;;  %543 = vmatprep.subr.bf16.mxu1 %v1295_v45  ;;  %v1390_v44 = vld [vmem:[#allocation7 + $0x1d4] ss:$8 sps:$4 sm:$0xff]   ;;  %v1385_v45 = vld [vmem:[#allocation7 + $0xd0] ss:$8 sps:$4 sm:$0xff]  }
  0x53   :  { %503 = vmatpush2.bf16.msra.mxu0 %v1297_v47  ;;  %544 = vmatpush2.bf16.msra.mxu1 %v1298_v49  ;;  %v1393_v47 = vld [vmem:[#allocation7 + $0xc4] ss:$8 sps:$4 sm:$0xff]   ;;  %v1391_v49 = vld [vmem:[#allocation7 + $0xc0] ss:$8 sps:$4 sm:$0xff]  }
  0x54   :  { %504 = vmatprep.subr.bf16.mxu0 %v1299_v50  ;;  %545 = vmatprep.subr.bf16.mxu1 %v1301_v51  ;;  %v1394_v50 = vld [vmem:[#allocation7 + $0x1c0] ss:$8 sps:$4 sm:$0xff]   ;;  %v1399_v51 = vld [vmem:[#allocation7 + $0xb4] ss:$8 sps:$4 sm:$0xff]  }
  0x57   :  { %505 = vmatpush2.bf16.msra.mxu0 %v1303_v52  ;;  %546 = vmatpush2.bf16.msra.mxu1 %v1304_v53  ;;  %v1402_v52 = vld [vmem:[#allocation7 + $0x1b4] ss:$8 sps:$4 sm:$0xff]   ;;  %v1397_v53 = vld [vmem:[#allocation7 + $0xb0] ss:$8 sps:$4 sm:$0xff]  }
  0x58   :  { %506 = vmatprep.subr.bf16.mxu0 %v1305_v54  ;;  %547 = vmatprep.subr.bf16.mxu1 %v1307_v55  ;;  %v1400_v54 = vld [vmem:[#allocation7 + $0x1b0] ss:$8 sps:$4 sm:$0xff]   ;;  %v1405_v55 = vld [vmem:[#allocation7 + $0xa4] ss:$8 sps:$4 sm:$0xff]  }
  0x5b   :  { %507 = vmatpush2.bf16.msra.mxu0 %v1309_v56  ;;  %548 = vmatpush2.bf16.msra.mxu1 %v1310_v57  ;;  %v1408_v56 = vld [vmem:[#allocation7 + $0x1a4] ss:$8 sps:$4 sm:$0xff]   ;;  %v1403_v57 = vld [vmem:[#allocation7 + $0xa0] ss:$8 sps:$4 sm:$0xff]  }
  0x5c   :  { %508 = vmatprep.subr.bf16.mxu0 %v1311_v58  ;;  %549 = vmatprep.subr.bf16.mxu1 %v1313_v59  ;;  %v1406_v58 = vld [vmem:[#allocation7 + $0x1a0] ss:$8 sps:$4 sm:$0xff]   ;;  %v1411_v59 = vld [vmem:[#allocation7 + $0x94] ss:$8 sps:$4 sm:$0xff]  }
  0x5f   :  { %509 = vmatpush2.bf16.msra.mxu0 %v1315_v60  ;;  %550 = vmatpush2.bf16.msra.mxu1 %v1316_v61  ;;  %v1414_v60 = vld [vmem:[#allocation7 + $0x194] ss:$8 sps:$4 sm:$0xff]   ;;  %v1409_v61 = vld [vmem:[#allocation7 + $0x90] ss:$8 sps:$4 sm:$0xff]  }
  0x60   :  { %510 = vmatprep.subr.bf16.mxu0 %v1317_v62  ;;  %551 = vmatprep.subr.bf16.mxu1 %v1319_v63  ;;  %v1412_v62 = vld [vmem:[#allocation7 + $0x190] ss:$8 sps:$4 sm:$0xff]   ;;  %v1415_v63 = vld [vmem:[#allocation7 + $0x80] ss:$8 sps:$4 sm:$0xff]  }
  0x63   :  { %511 = vmatpush2.bf16.msra.mxu0 %v1321_v0  ;;  %552 = vmatpush2.bf16.msra.mxu1 %v1322_v1  ;;  %v1417_v0 = vld [vmem:[#allocation7 + $0x84] ss:$8 sps:$4 sm:$0xff]   ;;  %v1418_v1 = vld [vmem:[#allocation7 + $0x180] ss:$8 sps:$4 sm:$0xff]  }
  0x64   :  { %974 = vmatprep.subr.bf16.mxu0 %v1327_v2  ;;  %1015 = vmatprep.subr.bf16.mxu1 %v1330_v3  ;;  %v1420_v2 = vld [vmem:[#allocation7 + $0x184] ss:$8 sps:$4 sm:$0xff]   ;;  %v133_v3 = vlaneseq }
  0x66   :  { %513 = vmatmul.mubr.bf16.vlgmr.msra.gmra.mxu0 %v1090_v4  ;;  %554 = vmatmul.mubr.bf16.vlgmr.msra.gmra.mxu1 %v1090_v4  ;;  %v134_v4 = vshrl.u32 %v133_v3, 7 }
  0x67   :  { %975 = vmatpush1.bf16.msra.mxu0 %v1325_v5  ;;  %1016 = vmatpush1.bf16.msra.mxu1 %v1328_v6 }
  0x68   :  { %976 = vmatprep.subr.bf16.mxu0 %v1333_v7  ;;  %1017 = vmatprep.subr.bf16.mxu1 %v1336_v8  ;;  %v1541_v5 = vsub.s32 0, %v134_v4  ;;  %v143_v6 = vsub.s32 2, %v134_v4  ;;  %v131_v7 = vld [vmem:[%s1568_s2] sm:$0xf]  ;;  %v1546_v8 = vsub.s32 1, %v134_v4 }
  0x6b   :  { %977 = vmatpush1.bf16.msra.mxu0 %v1331_v9  ;;  %1018 = vmatpush1.bf16.msra.mxu1 %v1334_v10  ;;  %v147_v9 = vsub.s32 3, %v134_v4  ;;  %v136_v10 = vrot.slane %v131_v7, %v1541_v5 }
  0x6c   :  { %978 = vmatprep.subr.bf16.mxu0 %v1339_v11  ;;  %1019 = vmatprep.subr.bf16.mxu1 %v1342_v12  ;;  %v144_v11 = vrot.slane %v131_v7, %v143_v6 }
  0x6f   :  { %979 = vmatpush1.bf16.msra.mxu0 %v1337_v13  ;;  %1020 = vmatpush1.bf16.msra.mxu1 %v1340_v14  ;;  %v140_v14 = vrot.slane %v131_v7, %v1546_v8 }
  0x70   :  { %980 = vmatprep.subr.bf16.mxu0 %v1345_v15  ;;  %1021 = vmatprep.subr.bf16.mxu1 %v1348_v16  ;;  %v148_v15 = vrot.slane %v131_v7, %v147_v9 }
  0x73   :  { %981 = vmatpush1.bf16.msra.mxu0 %v1343_v17  ;;  %1022 = vmatpush1.bf16.msra.mxu1 %v1346_v18 }
  0x74   :  { %982 = vmatprep.subr.bf16.mxu0 %v1351_v19  ;;  %1023 = vmatprep.subr.bf16.mxu1 %v1354_v20 }
  0x77   :  { %983 = vmatpush1.bf16.msra.mxu0 %v1349_v21  ;;  %1024 = vmatpush1.bf16.msra.mxu1 %v1352_v22 }
  0x78   :  { %984 = vmatprep.subr.bf16.mxu0 %v1357_v23  ;;  %1025 = vmatprep.subr.bf16.mxu1 %v1360_v24 }
  0x7b   :  { %985 = vmatpush1.bf16.msra.mxu0 %v1355_v25  ;;  %1026 = vmatpush1.bf16.msra.mxu1 %v1358_v26 }
  0x7c   :  { %986 = vmatprep.subr.bf16.mxu0 %v1363_v27  ;;  %1027 = vmatprep.subr.bf16.mxu1 %v1366_v28 }
  0x7f   :  { %987 = vmatpush1.bf16.msra.mxu0 %v1361_v29  ;;  %1028 = vmatpush1.bf16.msra.mxu1 %v1364_v30 }
  0x80   :  { %988 = vmatprep.subr.bf16.mxu0 %v1369_v31  ;;  %1029 = vmatprep.subr.bf16.mxu1 %v1372_v32 }
  0x83   :  { %989 = vmatpush1.bf16.msra.mxu0 %v1367_v33  ;;  %1030 = vmatpush1.bf16.msra.mxu1 %v1370_v34 }
  0x84   :  { %990 = vmatprep.subr.bf16.mxu0 %v1375_v35  ;;  %1031 = vmatprep.subr.bf16.mxu1 %v1378_v36 }
  0x87   :  { %991 = vmatpush2.bf16.msra.mxu0 %v1373_v37  ;;  %1032 = vmatpush2.bf16.msra.mxu1 %v1376_v38  ;;  %v642_v38 = vld [vmem:[%s1570_s4] sm:$0x3] }
  0x88   :  { %992 = vmatprep.subr.bf16.mxu0 %v1381_v39  ;;  %1033 = vmatprep.subr.bf16.mxu1 %v1384_v40  ;;  %v647_v39 = vrot.slane %v642_v38, %v1541_v5  ;;  %v651_v40 = vrot.slane %v642_v38, %v1546_v8 }
  0x8b   :  { %993 = vmatpush2.bf16.msra.mxu0 %v1379_v41  ;;  %1034 = vmatpush2.bf16.msra.mxu1 %v1382_v42 }
  0x8c   :  { %994 = vmatprep.subr.bf16.mxu0 %v1387_v43  ;;  %1035 = vmatprep.subr.bf16.mxu1 %v1390_v44 }
  0x8f   :  { %995 = vmatpush2.bf16.msra.mxu0 %v1385_v45  ;;  %1036 = vmatpush2.bf16.msra.mxu1 %v1388_v46 }
  0x90   :  { %996 = vmatprep.subr.bf16.mxu0 %v1393_v47  ;;  %1037 = vmatprep.subr.bf16.mxu1 %v1396_v48  ;;  %v1062_v48 = vld [vmem:[%s1571_s5] sm:$0x3] }
  0x93   :  { %997 = vmatpush2.bf16.msra.mxu0 %v1391_v49  ;;  %1038 = vmatpush2.bf16.msra.mxu1 %v1394_v50 }
  0x94   :  { %998 = vmatprep.subr.bf16.mxu0 %v1399_v51  ;;  %1039 = vmatprep.subr.bf16.mxu1 %v1402_v52 }
  0x97   :  { %999 = vmatpush2.bf16.msra.mxu0 %v1397_v53  ;;  %1040 = vmatpush2.bf16.msra.mxu1 %v1400_v54  ;;  %v1067_v54 = vrot.slane %v1062_v48, %v1541_v5 }
  0x98   :  { %1000 = vmatprep.subr.bf16.mxu0 %v1405_v55  ;;  %1041 = vmatprep.subr.bf16.mxu1 %v1408_v56  ;;  %v1071_v55 = vrot.slane %v1062_v48, %v1546_v8 }
  0x9b   :  { %1001 = vmatpush2.bf16.msra.mxu0 %v1403_v57  ;;  %1042 = vmatpush2.bf16.msra.mxu1 %v1406_v58 }
  0x9c   :  { %1002 = vmatprep.subr.bf16.mxu0 %v1411_v59  ;;  %1043 = vmatprep.subr.bf16.mxu1 %v1414_v60 }
  0x9f   :  { %1003 = vmatpush2.bf16.msra.mxu0 %v1409_v61  ;;  %1044 = vmatpush2.bf16.msra.mxu1 %v1412_v62 }
  0xa0   :  { %1004 = vmatprep.subr.bf16.mxu0 %v1417_v0  ;;  %1045 = vmatprep.subr.bf16.mxu1 %v1420_v2 }
  0xa3   :  { %1005 = vmatpush2.bf16.msra.mxu0 %v1415_v63  ;;  %1046 = vmatpush2.bf16.msra.mxu1 %v1418_v1  ;;  %v1080_v63 = vstv %s1572_s6 }
 0x126   :  { %v514_v12 = vpop.f32.mrf.mxu0  ;;  %v555_v13 = vpop.f32.mrf.mxu1 }
 0x127   :  { %v515_v16 = vadd.f32 %v514_v12, %v136_v10  ;;  %v556_v17 = vadd.f32 %v555_v13, %v144_v11 }
 0x128   :  { %v516_v18 = vpop.f32.mrf.mxu0  ;;  %v557_v19 = vpop.f32.mrf.mxu1 }
 0x129   :  { %v566_v20 = vmul.f32 0.2, %v515_v16  ;;  %vm562_vm0 = vcmp.gt.f32.partialorder %v515_v16, 0.0  ;;  %v568_v21 = vmul.f32 0.2, %v556_v17  ;;  %v517_v22 = vadd.f32 %v516_v18, %v140_v14 }
 0x12a   :  { %v558_v23 = vadd.f32 %v557_v19, %v148_v15  ;;  %v518_v24 = vpop.f32.mrf.mxu0  ;;  %v559_v25 = vpop.f32.mrf.mxu1  ;;  %vm564_vm1 = vcmp.gt.f32.partialorder %v556_v17, 0.0 }
 0x12b   :  { %vm563_vm2 = vcmp.gt.f32.partialorder %v517_v22, 0.0  ;;  %v567_v26 = vmul.f32 0.2, %v517_v22  ;;  %v570_v29 = vsel %vm562_vm0, %v515_v16, %v566_v20  ;;  %v572_v31 = vsel %vm564_vm1, %v556_v17, %v568_v21 }
 0x12c   :  { %v519_v27 = vpop.f32.mrf.mxu0  ;;  %v560_v28 = vpop.f32.mrf.mxu1  ;;  %vm565_vm3 = vcmp.gt.f32.partialorder %v558_v23, 0.0  ;;  %v569_v30 = vmul.f32 0.2, %v558_v23  ;;  %v574_v35 = vpack.c.bf16 %v570_v29, %v570_v29  ;;  %v576_v37 = vpack.c.bf16 %v572_v31, %v572_v31 }
 0x12d   :  { %v571_v32 = vsel %vm563_vm2, %v517_v22, %v567_v26 }
 0x12e   :  { %v575_v33 = vpack.c.bf16 %v571_v32, %v571_v32  ;;  %v573_v34 = vsel %vm565_vm3, %v558_v23, %v569_v30 }
 0x12f   :  { %v577_v36 = vpack.c.bf16 %v573_v34, %v573_v34 }
 0x130   :  { %1006 = vmatprep.mubr.bf16.mxu0 %v575_v33 }
 0x131   :  { %1047 = vmatprep.mubr.bf16.mxu1 %v577_v36  ;;  %1007 = vmatmul.mubr.bf16.vlgmr.msra.gmra.mxu0 %v574_v35 }
 0x132   :  { %1048 = vmatmul.mubr.bf16.vlgmr.msra.gmra.mxu1 %v576_v37 }
 0x1f1   :  { %v1008_v41 = vpop.f32.mrf.mxu0 }
 0x1f2   :  { %v1009_v42 = vadd.f32 %v1008_v41, %v647_v39  ;;  %v1049_v43 = vpop.f32.mrf.mxu1 }
 0x1f3   :  { %v1010_v44 = vpop.f32.mrf.mxu0 }
 0x1f4   :  { %v1050_v45 = vadd.f32 %v1049_v43, %v1009_v42  ;;  %v1011_v46 = vadd.f32 %v1010_v44, %v651_v40  ;;  %v1051_v47 = vpop.f32.mrf.mxu1 }
 0x1f5   :  { %v1012_v49 = vpop.f32.mrf.mxu0 }
 0x1f6   :  { %vm1056_vm4 = vcmp.gt.f32.partialorder %v1050_v45, 0.0  ;;  %v1058_v50 = vmul.f32 0.2, %v1050_v45  ;;  %v1052_v51 = vadd.f32 %v1051_v47, %v1011_v46  ;;  %v1053_v52 = vpop.f32.mrf.mxu1 }
 0x1f7   :  { %v1013_v53 = vpop.f32.mrf.mxu0 }
 0x1f8   :  { %vm1057_vm5 = vcmp.gt.f32.partialorder %v1052_v51, 0.0  ;;  %v1059_v56 = vmul.f32 0.2, %v1052_v51  ;;  %v1054_v57 = vpop.f32.mrf.mxu1  ;;  %v1060_v58 = vsel %vm1056_vm4, %v1050_v45, %v1058_v50 }
 0x1f9   :  { %v1074_v60 = vmul.f32 %v1067_v54, %v1060_v58 }
 0x1fa   :  { %v1061_v59 = vsel %vm1057_vm5, %v1052_v51, %v1059_v56 }
 0x1fb   :  { %v1075_v61 = vmul.f32 %v1071_v55, %v1061_v59 }
 0x1fd   :  { %v1076_v62 = vadd.f32 %v1075_v61, %v1074_v60 }
 0x1ff   :  { %1077 = vadd.xlane.f32.xlu0 %v1076_v62 }
 0x288   :  { %v1078_v0 = vpop.xlane.xlu0 %1077 }
 0x289   :  { %v1081_v1 = vadd.f32 %v1080_v63, %v1078_v0 }
 0x28b   :  { %1083 = vst.msk [vmem:[%s1573_s7] sm:$0xff] %vm1082_vm6, %v1081_v1 }
 0x28c   :  { %1088 = vsyncpa [#allocation4], 1 }
 0x28d   :  { %1089 = vsyncpa [#allocation6], 1 }

</bundles_post_ra>
